<compile_context>
chip_gen: v7x
topology: tpu7x:2x2x1
jax: 0.10.0
libtpu: 0.0.40
codegen_flags: <defaults>
</compile_context>

<pallas_src>
import functools

import jax
import jax.numpy as jnp
from jax.experimental import pallas as pl
from jax.experimental.pallas import tpu as pltpu

N = 4                       # window_size
SIDE = 2 * N + 1            # 9
IN_DIM = SIDE * SIDE * 6    # 486
HIDDEN = 128
EMBED = 32


def _round_up(x, m):
    return (x + m - 1) // m * m


def autoencoder_kernel(x_ref,
                       w1, b1, w2, b2, w3, b3,
                       w4, b4, w5, b5, w6, b6,
                       out_ref, *, compute_dtype):
    def dense(h, w_ref, b_ref, relu):
        # Matmul in compute_dtype (bf16 for MXU throughput / bandwidth), f32
        # accumulation, bias + nonlinearity in f32 (VPU-friendly on v5e too).
        y = jnp.dot(h.astype(compute_dtype), w_ref[...],
                    preferred_element_type=jnp.float32) + b_ref[...]
        return jnp.maximum(y, 0.0) if relu else y

    x = x_ref[...]
    # encoder
    h = dense(x, w1, b1, True)
    h = dense(h, w2, b2, True)
    z = dense(h, w3, b3, False)
    # decoder
    h = dense(z, w4, b4, True)
    h = dense(h, w5, b5, True)
    y = dense(h, w6, b6, False)
    # Hardsigmoid: clip(y/6 + 1/2, 0, 1)
    out_ref[...] = jnp.clip(y * (1.0 / 6.0) + 0.5, 0.0, 1.0).astype(out_ref.dtype)


def make_params(key):
    """Deterministic parameter init. Weights as (in, out); biases as (1, out)."""
    dims = [(IN_DIM, HIDDEN), (HIDDEN, HIDDEN), (HIDDEN, EMBED),     # encoder
            (EMBED, HIDDEN), (HIDDEN, HIDDEN), (HIDDEN, IN_DIM)]     # decoder
    params = []
    for din, dout in dims:
        kw, kb, key = jax.random.split(key, 3)
        bound = 1.0 / jnp.sqrt(jnp.float32(din))  # torch nn.Linear default bound
        w = jax.random.uniform(kw, (din, dout), jnp.float32, -bound, bound)
        b = jax.random.uniform(kb, (1, dout), jnp.float32, -bound, bound)
        params += [w, b]
    return params


def prepare_kernel_params(params, compute_dtype=jnp.float32):
    """One-time (init-time) param prep: weights -> compute_dtype, biases stay f32.

    Call ONCE and reuse the result across forward calls (hoisted per perf review).
    """
    out = []
    for i, p in enumerate(params):
        out.append(p.astype(compute_dtype) if i % 2 == 0 else p.astype(jnp.float32))
    return out


def agent_forward(x_nchw, kparams, *, batch_tile=1024, out_dtype=None):
    """x_nchw: (B, 6, 9, 9) -> (B, 6, 9, 9).

    kparams must come from prepare_kernel_params (called once at init).
    Output dtype follows the input dtype unless out_dtype is given, so a bf16
    producer gets bf16 I/O end-to-end (halves HBM traffic on the bound path).
    """
    B = x_nchw.shape[0]
    compute_dtype = kparams[0].dtype
    if out_dtype is None:
        out_dtype = x_nchw.dtype

    # Metadata-only flatten; no padded copy of x is materialized.
    x_flat = x_nchw.reshape(B, IN_DIM)

    # Batch tile: big enough to amortize per-step overhead, capped at ceil(B/2)
    # (rounded to the sublane multiple of 8) so the grid has >= 2 steps and both
    # v7x TensorCores are used; ragged last block is handled by Pallas masking.
    tile = min(batch_tile, max(8, _round_up(pl.cdiv(B, 2), 8)))
    grid = (pl.cdiv(B, tile),)

    # Grid-invariant full-array blocks for every parameter (small; stay resident).
    param_specs = [pl.BlockSpec(p.shape, lambda i: (0, 0)) for p in kparams]

    kernel = functools.partial(autoencoder_kernel, compute_dtype=compute_dtype)

    out_flat = pl.pallas_call(
        kernel,
        out_shape=jax.ShapeDtypeStruct((B, IN_DIM), out_dtype),
        grid_spec=pltpu.PrefetchScalarGridSpec(
            num_scalar_prefetch=0,
            grid=grid,
            in_specs=[pl.BlockSpec((tile, IN_DIM), lambda i: (i, 0))]
                     + param_specs,
            out_specs=pl.BlockSpec((tile, IN_DIM), lambda i: (i, 0)),
        ),
        compiler_params=pltpu.CompilerParams(
            dimension_semantics=("parallel",),
            vmem_limit_bytes=48 * 1024 * 1024),
    )(x_flat, *kparams)

    return out_flat.reshape(B, 6, SIDE, SIDE)


def agent_forward_ref(x_nchw, params):
    """Pure-JAX reference of the original forward pass."""
    w1, b1, w2, b2, w3, b3, w4, b4, w5, b5, w6, b6 = params
    x = x_nchw.reshape(x_nchw.shape[0], IN_DIM)
    h = jnp.maximum(x @ w1 + b1, 0.0)
    h = jnp.maximum(h @ w2 + b2, 0.0)
    z = h @ w3 + b3
    h = jnp.maximum(z @ w4 + b4, 0.0)
    h = jnp.maximum(h @ w5 + b5, 0.0)
    y = h @ w6 + b6
    y = jnp.clip(y / 6.0 + 0.5, 0.0, 1.0)
    return y.reshape(-1, 6, SIDE, SIDE)


if __name__ == "__main__":
    key = jax.random.PRNGKey(0)
    kx, kp = jax.random.split(key)
    # B deliberately NOT a multiple of 8: exercises the ragged last grid block
    # (boundary-masked writes), which replaced the old wrapper-side batch pad.
    B = 10
    x = jax.random.normal(kx, (B, 6, SIDE, SIDE), jnp.float32)
    params = make_params(kp)

    ref = agent_forward_ref(x, params)

    # f32 compute path (module-exact semantics up to TPU MXU f32 rounding).
    kparams_f32 = prepare_kernel_params(params, jnp.float32)   # once, at init
    out = jax.block_until_ready(agent_forward(x, kparams_f32))
    assert out.shape == (B, 6, SIDE, SIDE)
    assert out.dtype == jnp.float32
    assert jnp.max(jnp.abs(out - ref)) < 1e-4

    # bf16 I/O + MXU path (recommended default on v5e; bandwidth win on v6e/v7x).
    # The x cast here stands in for an upstream producer that already emits bf16.
    kparams_bf16 = prepare_kernel_params(params, jnp.bfloat16)  # once, at init
    out_bf16 = jax.block_until_ready(
        agent_forward(x.astype(jnp.bfloat16), kparams_bf16))
    assert out_bf16.dtype == jnp.bfloat16
    assert jnp.max(jnp.abs(out_bf16.astype(jnp.float32) - ref)) < 1e-1

    print("KERNEL_OK")
</pallas_src>

<mosaic_0001>
module attributes {stable_mosaic.version = 11 : i64} {
  func.func @autoencoder_kernel(%arg0: i32, %arg1: memref<8x486xf32, #tpu.memory_space<vmem>>, %arg2: memref<486x128xf32, #tpu.memory_space<vmem>>, %arg3: memref<1x128xf32, #tpu.memory_space<vmem>>, %arg4: memref<128x128xf32, #tpu.memory_space<vmem>>, %arg5: memref<1x128xf32, #tpu.memory_space<vmem>>, %arg6: memref<128x32xf32, #tpu.memory_space<vmem>>, %arg7: memref<1x32xf32, #tpu.memory_space<vmem>>, %arg8: memref<32x128xf32, #tpu.memory_space<vmem>>, %arg9: memref<1x128xf32, #tpu.memory_space<vmem>>, %arg10: memref<128x128xf32, #tpu.memory_space<vmem>>, %arg11: memref<1x128xf32, #tpu.memory_space<vmem>>, %arg12: memref<128x486xf32, #tpu.memory_space<vmem>>, %arg13: memref<1x486xf32, #tpu.memory_space<vmem>>, %arg14: memref<8x486xf32, #tpu.memory_space<vmem>>) attributes {dimension_semantics = [#tpu.dimension_semantics<parallel>], iteration_bounds = array<i64: 2>, scalar_prefetch = 0 : i64, scratch_operands = 0 : i64, tpu.core_type = #tpu.core_type<tc>, window_params = [{transform_indices = @transform_0, window_bounds = array<i64: 8, 486>}, {pipeline_mode = #tpu.pipeline_mode<synchronous>, transform_indices = @transform_1, window_bounds = array<i64: 486, 128>}, {pipeline_mode = #tpu.pipeline_mode<synchronous>, transform_indices = @transform_2, window_bounds = array<i64: 1, 128>}, {pipeline_mode = #tpu.pipeline_mode<synchronous>, transform_indices = @transform_3, window_bounds = array<i64: 128, 128>}, {pipeline_mode = #tpu.pipeline_mode<synchronous>, transform_indices = @transform_4, window_bounds = array<i64: 1, 128>}, {pipeline_mode = #tpu.pipeline_mode<synchronous>, transform_indices = @transform_5, window_bounds = array<i64: 128, 32>}, {pipeline_mode = #tpu.pipeline_mode<synchronous>, transform_indices = @transform_6, window_bounds = array<i64: 1, 32>}, {pipeline_mode = #tpu.pipeline_mode<synchronous>, transform_indices = @transform_7, window_bounds = array<i64: 32, 128>}, {pipeline_mode = #tpu.pipeline_mode<synchronous>, transform_indices = @transform_8, window_bounds = array<i64: 1, 128>}, {pipeline_mode = #tpu.pipeline_mode<synchronous>, transform_indices = @transform_9, window_bounds = array<i64: 128, 128>}, {pipeline_mode = #tpu.pipeline_mode<synchronous>, transform_indices = @transform_10, window_bounds = array<i64: 1, 128>}, {pipeline_mode = #tpu.pipeline_mode<synchronous>, transform_indices = @transform_11, window_bounds = array<i64: 128, 486>}, {pipeline_mode = #tpu.pipeline_mode<synchronous>, transform_indices = @transform_12, window_bounds = array<i64: 1, 486>}, {transform_indices = @transform_13, window_bounds = array<i64: 8, 486>}]} {
    %c0 = arith.constant 0 : index
    %c0_0 = arith.constant 0 : index
    %0 = vector.load %arg1[%c0, %c0_0] : memref<8x486xf32, #tpu.memory_space<vmem>>, vector<8x486xf32>
    %c0_1 = arith.constant 0 : index
    %c0_2 = arith.constant 0 : index
    %1 = vector.load %arg2[%c0_1, %c0_2] : memref<486x128xf32, #tpu.memory_space<vmem>>, vector<486x128xf32>
    %cst = arith.constant dense<0.000000e+00> : vector<8x128xf32>
    %2 = tpu.matmul %0, %1, %cst {dimension_numbers = #tpu.dot_dimension_numbers<[1], [0], [0], [1], [0, 0, 1, 1], [], []>} : vector<8x486xf32>, vector<486x128xf32>, vector<8x128xf32> -> vector<8x128xf32>
    %c0_3 = arith.constant 0 : index
    %c0_4 = arith.constant 0 : index
    %3 = vector.load %arg3[%c0_3, %c0_4] : memref<1x128xf32, #tpu.memory_space<vmem>>, vector<1x128xf32>
    %4 = vector.broadcast %3 : vector<1x128xf32> to vector<8x128xf32>
    %5 = arith.addf %2, %4 : vector<8x128xf32>
    %cst_5 = arith.constant 0.000000e+00 : f32
    %6 = vector.broadcast %cst_5 : f32 to vector<8x128xf32>
    %7 = arith.maximumf %5, %6 : vector<8x128xf32>
    %c0_6 = arith.constant 0 : index
    %c0_7 = arith.constant 0 : index
    %8 = vector.load %arg4[%c0_6, %c0_7] : memref<128x128xf32, #tpu.memory_space<vmem>>, vector<128x128xf32>
    %cst_8 = arith.constant dense<0.000000e+00> : vector<8x128xf32>
    %9 = tpu.matmul %7, %8, %cst_8 {dimension_numbers = #tpu.dot_dimension_numbers<[1], [0], [0], [1], [0, 0, 1, 1], [], []>} : vector<8x128xf32>, vector<128x128xf32>, vector<8x128xf32> -> vector<8x128xf32>
    %c0_9 = arith.constant 0 : index
    %c0_10 = arith.constant 0 : index
    %10 = vector.load %arg5[%c0_9, %c0_10] : memref<1x128xf32, #tpu.memory_space<vmem>>, vector<1x128xf32>
    %11 = vector.broadcast %10 : vector<1x128xf32> to vector<8x128xf32>
    %12 = arith.addf %9, %11 : vector<8x128xf32>
    %cst_11 = arith.constant 0.000000e+00 : f32
    %13 = vector.broadcast %cst_11 : f32 to vector<8x128xf32>
    %14 = arith.maximumf %12, %13 : vector<8x128xf32>
    %c0_12 = arith.constant 0 : index
    %c0_13 = arith.constant 0 : index
    %15 = vector.load %arg6[%c0_12, %c0_13] : memref<128x32xf32, #tpu.memory_space<vmem>>, vector<128x32xf32>
    %cst_14 = arith.constant dense<0.000000e+00> : vector<8x32xf32>
    %16 = tpu.matmul %14, %15, %cst_14 {dimension_numbers = #tpu.dot_dimension_numbers<[1], [0], [0], [1], [0, 0, 1, 1], [], []>} : vector<8x128xf32>, vector<128x32xf32>, vector<8x32xf32> -> vector<8x32xf32>
    %c0_15 = arith.constant 0 : index
    %c0_16 = arith.constant 0 : index
    %17 = vector.load %arg7[%c0_15, %c0_16] : memref<1x32xf32, #tpu.memory_space<vmem>>, vector<1x32xf32>
    %18 = vector.broadcast %17 : vector<1x32xf32> to vector<8x32xf32>
    %19 = arith.addf %16, %18 : vector<8x32xf32>
    %c0_17 = arith.constant 0 : index
    %c0_18 = arith.constant 0 : index
    %20 = vector.load %arg8[%c0_17, %c0_18] : memref<32x128xf32, #tpu.memory_space<vmem>>, vector<32x128xf32>
    %cst_19 = arith.constant dense<0.000000e+00> : vector<8x128xf32>
    %21 = tpu.matmul %19, %20, %cst_19 {dimension_numbers = #tpu.dot_dimension_numbers<[1], [0], [0], [1], [0, 0, 1, 1], [], []>} : vector<8x32xf32>, vector<32x128xf32>, vector<8x128xf32> -> vector<8x128xf32>
    %c0_20 = arith.constant 0 : index
    %c0_21 = arith.constant 0 : index
    %22 = vector.load %arg9[%c0_20, %c0_21] : memref<1x128xf32, #tpu.memory_space<vmem>>, vector<1x128xf32>
    %23 = vector.broadcast %22 : vector<1x128xf32> to vector<8x128xf32>
    %24 = arith.addf %21, %23 : vector<8x128xf32>
    %cst_22 = arith.constant 0.000000e+00 : f32
    %25 = vector.broadcast %cst_22 : f32 to vector<8x128xf32>
    %26 = arith.maximumf %24, %25 : vector<8x128xf32>
    %c0_23 = arith.constant 0 : index
    %c0_24 = arith.constant 0 : index
    %27 = vector.load %arg10[%c0_23, %c0_24] : memref<128x128xf32, #tpu.memory_space<vmem>>, vector<128x128xf32>
    %cst_25 = arith.constant dense<0.000000e+00> : vector<8x128xf32>
    %28 = tpu.matmul %26, %27, %cst_25 {dimension_numbers = #tpu.dot_dimension_numbers<[1], [0], [0], [1], [0, 0, 1, 1], [], []>} : vector<8x128xf32>, vector<128x128xf32>, vector<8x128xf32> -> vector<8x128xf32>
    %c0_26 = arith.constant 0 : index
    %c0_27 = arith.constant 0 : index
    %29 = vector.load %arg11[%c0_26, %c0_27] : memref<1x128xf32, #tpu.memory_space<vmem>>, vector<1x128xf32>
    %30 = vector.broadcast %29 : vector<1x128xf32> to vector<8x128xf32>
    %31 = arith.addf %28, %30 : vector<8x128xf32>
    %cst_28 = arith.constant 0.000000e+00 : f32
    %32 = vector.broadcast %cst_28 : f32 to vector<8x128xf32>
    %33 = arith.maximumf %31, %32 : vector<8x128xf32>
    %c0_29 = arith.constant 0 : index
    %c0_30 = arith.constant 0 : index
    %34 = vector.load %arg12[%c0_29, %c0_30] : memref<128x486xf32, #tpu.memory_space<vmem>>, vector<128x486xf32>
    %cst_31 = arith.constant dense<0.000000e+00> : vector<8x486xf32>
    %35 = tpu.matmul %33, %34, %cst_31 {dimension_numbers = #tpu.dot_dimension_numbers<[1], [0], [0], [1], [0, 0, 1, 1], [], []>} : vector<8x128xf32>, vector<128x486xf32>, vector<8x486xf32> -> vector<8x486xf32>
    %c0_32 = arith.constant 0 : index
    %c0_33 = arith.constant 0 : index
    %36 = vector.load %arg13[%c0_32, %c0_33] : memref<1x486xf32, #tpu.memory_space<vmem>>, vector<1x486xf32>
    %37 = vector.broadcast %36 : vector<1x486xf32> to vector<8x486xf32>
    %38 = arith.addf %35, %37 : vector<8x486xf32>
    %cst_34 = arith.constant 0.166666672 : f32
    %39 = vector.broadcast %cst_34 : f32 to vector<8x486xf32>
    %40 = arith.mulf %38, %39 : vector<8x486xf32>
    %cst_35 = arith.constant 5.000000e-01 : f32
    %41 = vector.broadcast %cst_35 : f32 to vector<8x486xf32>
    %42 = arith.addf %40, %41 : vector<8x486xf32>
    %cst_36 = arith.constant 0.000000e+00 : f32
    %cst_37 = arith.constant 1.000000e+00 : f32
    %43 = vector.broadcast %cst_36 : f32 to vector<8x486xf32>
    %44 = arith.maximumf %43, %42 : vector<8x486xf32>
    %45 = vector.broadcast %cst_37 : f32 to vector<8x486xf32>
    %46 = arith.minimumf %45, %44 : vector<8x486xf32>
    %c0_38 = arith.constant 0 : index
    %c0_39 = arith.constant 0 : index
    %47 = vector.load %arg14[%c0_38, %c0_39] : memref<8x486xf32, #tpu.memory_space<vmem>>, vector<8x486xf32>
    tpu.vector_store %arg14[%c0_38, %c0_39], %46 {strides = array<i32>} : memref<8x486xf32, #tpu.memory_space<vmem>>, vector<8x486xf32>,
    return
  }
  func.func @transform_0(%arg0: i32) -> (i32, i32) {
    %c0_i32 = arith.constant 0 : i32
    %c0_i32_0 = arith.constant 0 : i32
    return %arg0, %c0_i32 : i32, i32
  }
  func.func @transform_1(%arg0: i32) -> (i32, i32) {
    %c0_i32 = arith.constant 0 : i32
    %c0_i32_0 = arith.constant 0 : i32
    %c0_i32_1 = arith.constant 0 : i32
    return %c0_i32, %c0_i32_0 : i32, i32
  }
  func.func @transform_2(%arg0: i32) -> (i32, i32) {
    %c0_i32 = arith.constant 0 : i32
    %c0_i32_0 = arith.constant 0 : i32
    %c0_i32_1 = arith.constant 0 : i32
    return %c0_i32, %c0_i32_0 : i32, i32
  }
  func.func @transform_3(%arg0: i32) -> (i32, i32) {
    %c0_i32 = arith.constant 0 : i32
    %c0_i32_0 = arith.constant 0 : i32
    %c0_i32_1 = arith.constant 0 : i32
    return %c0_i32, %c0_i32_0 : i32, i32
  }
  func.func @transform_4(%arg0: i32) -> (i32, i32) {
    %c0_i32 = arith.constant 0 : i32
    %c0_i32_0 = arith.constant 0 : i32
    %c0_i32_1 = arith.constant 0 : i32
    return %c0_i32, %c0_i32_0 : i32, i32
  }
  func.func @transform_5(%arg0: i32) -> (i32, i32) {
    %c0_i32 = arith.constant 0 : i32
    %c0_i32_0 = arith.constant 0 : i32
    %c0_i32_1 = arith.constant 0 : i32
    return %c0_i32, %c0_i32_0 : i32, i32
  }
  func.func @transform_6(%arg0: i32) -> (i32, i32) {
    %c0_i32 = arith.constant 0 : i32
    %c0_i32_0 = arith.constant 0 : i32
    %c0_i32_1 = arith.constant 0 : i32
    return %c0_i32, %c0_i32_0 : i32, i32
  }
  func.func @transform_7(%arg0: i32) -> (i32, i32) {
    %c0_i32 = arith.constant 0 : i32
    %c0_i32_0 = arith.constant 0 : i32
    %c0_i32_1 = arith.constant 0 : i32
    return %c0_i32, %c0_i32_0 : i32, i32
  }
  func.func @transform_8(%arg0: i32) -> (i32, i32) {
    %c0_i32 = arith.constant 0 : i32
    %c0_i32_0 = arith.constant 0 : i32
    %c0_i32_1 = arith.constant 0 : i32
    return %c0_i32, %c0_i32_0 : i32, i32
  }
  func.func @transform_9(%arg0: i32) -> (i32, i32) {
    %c0_i32 = arith.constant 0 : i32
    %c0_i32_0 = arith.constant 0 : i32
    %c0_i32_1 = arith.constant 0 : i32
    return %c0_i32, %c0_i32_0 : i32, i32
  }
  func.func @transform_10(%arg0: i32) -> (i32, i32) {
    %c0_i32 = arith.constant 0 : i32
    %c0_i32_0 = arith.constant 0 : i32
    %c0_i32_1 = arith.constant 0 : i32
    return %c0_i32, %c0_i32_0 : i32, i32
  }
  func.func @transform_11(%arg0: i32) -> (i32, i32) {
    %c0_i32 = arith.constant 0 : i32
    %c0_i32_0 = arith.constant 0 : i32
    %c0_i32_1 = arith.constant 0 : i32
    return %c0_i32, %c0_i32_0 : i32, i32
  }
  func.func @transform_12(%arg0: i32) -> (i32, i32) {
    %c0_i32 = arith.constant 0 : i32
    %c0_i32_0 = arith.constant 0 : i32
    %c0_i32_1 = arith.constant 0 : i32
    return %c0_i32, %c0_i32_0 : i32, i32
  }
  func.func @transform_13(%arg0: i32) -> (i32, i32) {
    %c0_i32 = arith.constant 0 : i32
    %c0_i32_0 = arith.constant 0 : i32
    return %arg0, %c0_i32 : i32, i32
  }
}

</mosaic_0001>

<bundles_post_ra>
// kernel: tpu_custom_call.1
= control target key start
LH: loop header
LB: loop body
LE: loop exit
PB: predicated region body
PF: predicated region fallthrough
CT: control target
= control target key end

     0   :  { %18 = vsyncpa [#allocation3], 0  ;;  %s2688_s0 = inlined_call_operand.vmem [shape: f32[10,486], index: 0, kind: input, shape index: {}]   ;;  %s2689_s1 = inlined_call_operand.vmem [shape: f32[486,128], index: 1, kind: input, shape index: {}]   ;;  %s2690_s2 = inlined_call_operand.vmem [shape: f32[1,128], index: 2, kind: input, shape index: {}]   ;;  %s2691_s3 = inlined_call_operand.vmem [shape: f32[128,128], index: 3, kind: input, shape index: {}]   ;;  %s2692_s4 = inlined_call_operand.vmem [shape: f32[1,128], index: 4, kind: input, shape index: {}]   ;;  %s2693_s5 = inlined_call_operand.vmem [shape: f32[128,32], index: 5, kind: input, shape index: {}]   ;;  %s2694_s6 = inlined_call_operand.vmem [shape: f32[1,32], index: 6, kind: input, shape index: {}]   ;;  %s2695_s7 = inlined_call_operand.vmem [shape: f32[32,128], index: 7, kind: input, shape index: {}]   ;;  %s2696_s8 = inlined_call_operand.vmem [shape: f32[1,128], index: 8, kind: input, shape index: {}]   ;;  %s2697_s9 = inlined_call_operand.vmem [shape: f32[128,128], index: 9, kind: input, shape index: {}]   ;;  %s2698_s10 = inlined_call_operand.vmem [shape: f32[1,128], index: 10, kind: input, shape index: {}]   ;;  %s2699_s11 = inlined_call_operand.vmem [shape: f32[128,486], index: 11, kind: input, shape index: {}]   ;;  %s2700_s12 = inlined_call_operand.vmem [shape: f32[1,486], index: 12, kind: input, shape index: {}]   ;;  %s2701_s13 = inlined_call_operand.hbm [shape: f32[10,486], index: 13, kind: output, shape index: {}]  }
   0x1   :  { %20 = vsyncpa [#allocation3 + $0x1], 0  ;;  %s1974_s25 = smov 0   ;;  %s1976_s26 = smov 0  }
   0x2   :  { %s1978_s27 = smov 0   ;;  %s1980_s28 = smov 0  }
   0x3 LB: > { %2706 = sst [smem:[#allocation5_spill]] %s1894_s27  ;;  %s1995_s29 = sadd.s32 4294967295, %s1898_s28   ;;  %s1898_s28 = sphi %s1980_s28, %s2713_s28   ;;  %s1894_s27 = sphi %s1978_s27, %s2715_s27   ;;  %s1890_s26 = sphi %s1976_s26, %s2717_s26   ;;  %s1886_s25 = sphi %s1974_s25, %s2716_s25  }
   0x4   : > { %s1349_s30 = sadd.s32 4294967294, %s1898_s28   ;;  %s1999_s14 = sadd.s32 1, %s1898_s28  }
   0x5   : > { %2707 = sst [smem:[#allocation6_spill]] %s1999_s14  ;;  %s311_s15 = sadd.s32 1, %s1894_s27 }
   0x6   : > { %s308_s16 = ssub.s32 %s1898_s28, %s1999_s14  ;;  %p321_p0 = scmp.ne.s32.totalorder %s1894_s27, %s1890_s26 }
   0x7   : > { %p309_p1 = scmp.eq.s32.totalorder %s308_s16, 0  ;;  %p322_p2 = scmp.eq.s32.totalorder %s1995_s29, 1 }
   0x8   : > { %p327_p3 = scmp.ne.s32.totalorder %s1890_s26, %s1886_s25  ;;  %p328_p4 = scmp.eq.s32.totalorder %s1349_s30, 1 }
   0x9   : > { %s2010_s17 = scalar_select %p309_p1, %s1894_s27, %s311_s15  }
   0xa   : > { %p2012_p5 = por %p322_p2, %p321_p0  ;;  %p2016_p6 = por %p328_p4, %p327_p3 }
   0xb   : > { %2708 = sst [smem:[#allocation7_spill]] %s2010_s17  ;;  %p1352_p7 = scmp.ge.s32.totalorder %s1898_s28, 1 }
   0xc   : > { %s2710_s19 = scalar_select %p2016_p6, 1, 0 }
   0xd   : > { %p390_p8 = scmp.lt.s32.totalorder %s1898_s28, 3 }
   0xe   : > { %2711 = sst [smem:[#allocation8_spill]] %s2710_s19 }
   0xf   : > { %p391_p9 = pnand %p1352_p7, %p390_p8 }
  0x10   : > { %v475_v0 = vld [vmem:[%s2689_s1 + $0x100] sm:$0xff] (!%p391_p9)  ;;  %v476_v1 = vld [vmem:[%s2689_s1 + $0x108] sm:$0xff] (!%p391_p9)  ;;  %v477_v2 = vld [vmem:[%s2689_s1 + $0x110] sm:$0xff] (!%p391_p9)  ;;  %v1900_v3 = vmov (!%p391_p9), 0.0|0.0   ;;  %p434_p10 = scmp.lt.s32.totalorder (!%p391_p9), %s1995_s29, 1  ;;  %vm511_vm0 = vcmask (!%p391_p9), 834560  }
  0x11   : > { %394 = sbr.rel (%p391_p9) target bundleno = 1391 (0x56f), region = 72  ;;  %1610 = vmatprep.subr.bf16.mxu1 (!%p391_p9), %v1900_v3  ;;  %v1611_v4 = vpack.c.bf16 (!%p391_p9), %v476_v1, %v475_v0  ;;  %v478_v5 = vld [vmem:[%s2689_s1 + $0x118] sm:$0xff] (!%p391_p9)  ;;  %v479_v7 = vld [vmem:[%s2689_s1 + $0x120] sm:$0xff] (!%p391_p9)  ;;  %v460_v9 = vld [vmem:[%s2689_s1 + $0x88] sm:$0xff] (!%p391_p9)  ;;  %vm515_vm1 = vcmask (!%p391_p9), 1045504   ;;  %vm1902_vm2 = vmmov (!%p391_p9), 0  }
  0x12   : > { %v1614_v6 = vpack.c.bf16 (!%p391_p9), %v478_v5, %v477_v2  ;;  %v459_v8 = vld [vmem:[%s2689_s1 + $0x80] sm:$0xff] (!%p391_p9)  ;;  %v480_v10 = vld [vmem:[%s2689_s1 + $0x128] sm:$0xff] (!%p391_p9)  ;;  %v461_v15 = vld [vmem:[%s2689_s1 + $0x90] sm:$0xff] (!%p391_p9)  ;;  %vm858_vm3 = vcmask (!%p391_p9), 261120   ;;  %s1370_s24 = sshll.u32 (!%p391_p9), %s1995_s29, 9 }
  0x13   : > { %1612 = vmatpush1.bf16.msra.mxu1 (!%p391_p9), %v1611_v4  ;;  %v1578_v11 = vpack.c.bf16 (!%p391_p9), %v460_v9, %v459_v8  ;;  %v443_v12 = vld [vmem:[%s2689_s1] sm:$0xff] (!%p391_p9)  ;;  %v444_v13 = vld [vmem:[%s2689_s1 + $0x8] sm:$0xff] (!%p391_p9)  ;;  %v462_v16 = vld [vmem:[%s2689_s1 + $0x98] sm:$0xff] (!%p391_p9)  ;;  %v1617_v20 = vpack.c.bf16 (!%p391_p9), %v480_v10, %v479_v7  ;;  %s2643_s22 = scalar_lea.hbm (!%p391_p9), %s2701_s13, %s1370_s24 }
  0x14   : > { %1613 = vmatprep.subr.bf16.mxu1 (!%p391_p9), %v1900_v3  ;;  %v1580_v14 = vpack.c.bf16 (!%p391_p9), %v444_v13, %v443_v12  ;;  %v1582_v17 = vpack.c.bf16 (!%p391_p9), %v462_v16, %v461_v15  ;;  %v445_v18 = vld [vmem:[%s2689_s1 + $0x10] sm:$0xff] (!%p391_p9)  ;;  %v446_v19 = vld [vmem:[%s2689_s1 + $0x18] sm:$0xff] (!%p391_p9)  ;;  %v463_v23 = vld [vmem:[%s2689_s1 + $0xa0] sm:$0xff] (!%p391_p9) }
  0x15   : > { %1579 = vmatprep.subr.bf16.mxu0 (!%p391_p9), %v1578_v11  ;;  %v481_v21 = vld [vmem:[%s2689_s1 + $0x130] sm:$0xff] (!%p391_p9)  ;;  %v1584_v22 = vpack.c.bf16 (!%p391_p9), %v446_v19, %v445_v18  ;;  %v464_v24 = vld [vmem:[%s2689_s1 + $0xa8] sm:$0xff] (!%p391_p9)  ;;  %v482_v25 = vld [vmem:[%s2689_s1 + $0x138] sm:$0xff] (!%p391_p9) }
  0x16   : > { %1581 = vmatpush3.bf16.msra.mxu0 (!%p391_p9), %v1580_v14  ;;  %v1586_v26 = vpack.c.bf16 (!%p391_p9), %v464_v24, %v463_v23  ;;  %v447_v27 = vld [vmem:[%s2689_s1 + $0x20] sm:$0xff] (!%p391_p9)  ;;  %v448_v28 = vld [vmem:[%s2689_s1 + $0x28] sm:$0xff] (!%p391_p9)  ;;  %v465_v29 = vld [vmem:[%s2689_s1 + $0xb0] sm:$0xff] (!%p391_p9)  ;;  %v1620_v31 = vpack.c.bf16 (!%p391_p9), %v482_v25, %v481_v21 }
  0x17   : > { %1615 = vmatpush1.bf16.msra.mxu1 (!%p391_p9), %v1614_v6  ;;  %1583 = vmatprep.subr.bf16.mxu0 (!%p391_p9), %v1582_v17  ;;  %v466_v30 = vld [vmem:[%s2689_s1 + $0xb8] sm:$0xff] (!%p391_p9)  ;;  %v483_v32 = vld [vmem:[%s2689_s1 + $0x140] sm:$0xff] (!%p391_p9)  ;;  %v1588_v33 = vpack.c.bf16 (!%p391_p9), %v448_v28, %v447_v27  ;;  %v484_v34 = vld [vmem:[%s2689_s1 + $0x148] sm:$0xff] (!%p391_p9) }
  0x18   : > { %1616 = vmatprep.subr.bf16.mxu1 %v1900_v3  ;;  %s435_s27 = scalar_select %p434_p10, %s1995_s29, 1  ;;  %v1590_v35 = vpack.c.bf16 %v466_v30, %v465_v29  ;;  %v449_v36 = vld [vmem:[%s2689_s1 + $0x30] sm:$0xff]  ;;  %v450_v37 = vld [vmem:[%s2689_s1 + $0x38] sm:$0xff]  ;;  %v467_v38 = vld [vmem:[%s2689_s1 + $0xc0] sm:$0xff]  ;;  %v1623_v40 = vpack.c.bf16 %v484_v34, %v483_v32 }
  0x19   : > { %v468_v39 = vld [vmem:[%s2689_s1 + $0xc8] sm:$0xff]  ;;  %v485_v41 = vld [vmem:[%s2689_s1 + $0x150] sm:$0xff]  ;;  %v1592_v42 = vpack.c.bf16 %v450_v37, %v449_v36  ;;  %v486_v43 = vld [vmem:[%s2689_s1 + $0x158] sm:$0xff] }
  0x1a   : > { %1585 = vmatpush3.bf16.msra.mxu0 %v1584_v22  ;;  %s1369_s15 = sshll.u32 %s435_s27, 5  ;;  %v1594_v44 = vpack.c.bf16 %v468_v39, %v467_v38  ;;  %v451_v45 = vld [vmem:[%s2689_s1 + $0x40] sm:$0xff]  ;;  %v452_v46 = vld [vmem:[%s2689_s1 + $0x48] sm:$0xff]  ;;  %v469_v47 = vld [vmem:[%s2689_s1 + $0xd0] sm:$0xff]  ;;  %v1626_v49 = vpack.c.bf16 %v486_v43, %v485_v41 }
  0x1b   : > { %1618 = vmatpush1.bf16.msra.mxu1 %v1617_v20  ;;  %1587 = vmatprep.subr.bf16.mxu0 %v1586_v26  ;;  %s2130_s30 = scalar_lea.vmem %s2688_s0, %s1369_s15  ;;  %v470_v48 = vld [vmem:[%s2689_s1 + $0xd8] sm:$0xff]  ;;  %v487_v50 = vld [vmem:[%s2689_s1 + $0x160] sm:$0xff]  ;;  %v1596_v51 = vpack.c.bf16 %v452_v46, %v451_v45  ;;  %v488_v53 = vld [vmem:[%s2689_s1 + $0x168] sm:$0xff]  ;;  %v1901_v46 = vmov 0.0   ;;  %s1903_s15 = smov [#allocation2]  }
  0x1c   : > { %1619 = vmatprep.subr.bf16.mxu1 %v1900_v3  ;;  %v440_v52 = vld [vmem:[%s2130_s30 + $0x8] sm:$0xff]  ;;  %v1598_v54 = vpack.c.bf16 %v470_v48, %v469_v47  ;;  %v453_v55 = vld [vmem:[%s2689_s1 + $0x50] sm:$0xff]  ;;  %v454_v56 = vld [vmem:[%s2689_s1 + $0x58] sm:$0xff]  ;;  %v1629_v60 = vpack.c.bf16 %v488_v53, %v487_v50  ;;  %s1840_s27 = sshll.u32 %s1903_s15, 4  ;;  %s1841_s27 = int_to_ptr.vmem [resolvable:$false] %s1840_s27 }
  0x1d   : > { %v471_v57 = vld [vmem:[%s2689_s1 + $0xe0] sm:$0xff]  ;;  %v472_v58 = vld [vmem:[%s2689_s1 + $0xe8] sm:$0xff]  ;;  %583 = vmatprep.mubr.f32.mxu0 %v440_v52  ;;  %v442_v59 = vld [vmem:[%s2130_s30 + $0x18] sm:$0xff]  ;;  %v1600_v62 = vpack.c.bf16 %v454_v56, %v453_v55  ;;  %s1842_s14 = scalar_lea.vmem %s1841_s27, 1024 }
  0x1e   : > { %1589 = vmatpush3.bf16.msra.mxu0 %v1588_v33  ;;  %1358 = vmatprep.mubr.msk.f32.mxu1 %vm511_vm0, %v442_v59  ;;  %v489_v61 = vld [vmem:[%s2689_s1 + $0x170] sm:$0xff]  ;;  %v490_v63 = vld [vmem:[%s2689_s1 + $0x178] sm:$0xff]  ;;  %v1602_v0 = vpack.c.bf16 %v472_v58, %v471_v57  ;;  %v455_v1 = vld [vmem:[%s2689_s1 + $0x60] sm:$0xff] }
  0x1f   : > { %1621 = vmatpush1.bf16.msra.mxu1 %v1620_v31  ;;  %1591 = vmatprep.subr.bf16.mxu0 %v1590_v35  ;;  %v456_v2 = vld [vmem:[%s2689_s1 + $0x68] sm:$0xff]  ;;  %v473_v4 = vld [vmem:[%s2689_s1 + $0xf0] sm:$0xff]  ;;  %v474_v5 = vld [vmem:[%s2689_s1 + $0xf8] sm:$0xff]  ;;  %v1632_v6 = vpack.c.bf16 %v490_v63, %v489_v61 }
  0x20   : > { %1622 = vmatprep.subr.bf16.mxu1 %v1900_v3  ;;  %v491_v7 = vld [vmem:[%s2689_s1 + $0x180] sm:$0xff]  ;;  %v1604_v8 = vpack.c.bf16 %v456_v2, %v455_v1  ;;  %v492_v9 = vld [vmem:[%s2689_s1 + $0x188] sm:$0xff]  ;;  %v1606_v10 = vpack.c.bf16 %v474_v5, %v473_v4  ;;  %v457_v11 = vld [vmem:[%s2689_s1 + $0x70] sm:$0xff] }
  0x21   : > { %v458_v12 = vld [vmem:[%s2689_s1 + $0x78] sm:$0xff]  ;;  %v1635_v13 = vpack.c.bf16 %v492_v9, %v491_v7  ;;  %v493_v14 = vld [vmem:[%s2689_s1 + $0x190] sm:$0xff]  ;;  %v660_v17 = vld [vmem:[%s2691_s3] sm:$0xff] }
  0x22   : > { %1593 = vmatpush3.bf16.msra.mxu0 %v1592_v42  ;;  %v1608_v15 = vpack.c.bf16 %v458_v12, %v457_v11  ;;  %v494_v16 = vld [vmem:[%s2689_s1 + $0x198] sm:$0xff]  ;;  %v661_v18 = vld [vmem:[%s2691_s3 + $0x8] sm:$0xff]  ;;  %v495_v20 = vld [vmem:[%s2689_s1 + $0x1a0] sm:$0xff] }
  0x23   : > { %1624 = vmatpush1.bf16.msra.mxu1 %v1623_v40  ;;  %1595 = vmatprep.subr.bf16.mxu0 %v1594_v44  ;;  %v1638_v19 = vpack.c.bf16 %v494_v16, %v493_v14  ;;  %v439_v21 = vld [vmem:[%s2130_s30] sm:$0xff]  ;;  %v1653_v22 = vpack.c.bf16 %v661_v18, %v660_v17  ;;  %v496_v23 = vld [vmem:[%s2689_s1 + $0x1a8] sm:$0xff]  ;;  %v662_v24 = vld [vmem:[%s2691_s3 + $0x10] sm:$0xff] }
  0x24   : > { %1625 = vmatprep.subr.bf16.mxu1 %v1900_v3  ;;  %v663_v25 = vld [vmem:[%s2691_s3 + $0x18] sm:$0xff]  ;;  %v1641_v26 = vpack.c.bf16 %v496_v23, %v495_v20  ;;  %v497_v27 = vld [vmem:[%s2689_s1 + $0x1b0] sm:$0xff]  ;;  %v664_v30 = vld [vmem:[%s2691_s3 + $0x20] sm:$0xff] }
  0x25   : > { %v1656_v28 = vpack.c.bf16 %v663_v25, %v662_v24  ;;  %v498_v29 = vld [vmem:[%s2689_s1 + $0x1b8] sm:$0xff]  ;;  %v665_v31 = vld [vmem:[%s2691_s3 + $0x28] sm:$0xff]  ;;  %v499_v33 = vld [vmem:[%s2689_s1 + $0x1c0] sm:$0xff] }
  0x26   : > { %1597 = vmatpush3.bf16.msra.mxu0 %v1596_v51  ;;  %v1644_v32 = vpack.c.bf16 %v498_v29, %v497_v27  ;;  %v1659_v34 = vpack.c.bf16 %v665_v31, %v664_v30  ;;  %v500_v35 = vld [vmem:[%s2689_s1 + $0x1c8] sm:$0xff]  ;;  %v666_v36 = vld [vmem:[%s2691_s3 + $0x30] sm:$0xff]  ;;  %v667_v37 = vld [vmem:[%s2691_s3 + $0x38] sm:$0xff] }
  0x27   : > { %1627 = vmatpush1.bf16.msra.mxu1 %v1626_v49  ;;  %1599 = vmatprep.subr.bf16.mxu0 %v1598_v54  ;;  %v1647_v38 = vpack.c.bf16 %v500_v35, %v499_v33  ;;  %v501_v39 = vld [vmem:[%s2689_s1 + $0x1d0] sm:$0xff]  ;;  %v1662_v40 = vpack.c.bf16 %v667_v37, %v666_v36  ;;  %v502_v41 = vld [vmem:[%s2689_s1 + $0x1d8] sm:$0xff]  ;;  %v668_v42 = vld [vmem:[%s2691_s3 + $0x40] sm:$0xff] }
  0x28   : > { %1628 = vmatprep.subr.bf16.mxu1 %v1900_v3  ;;  %v669_v43 = vld [vmem:[%s2691_s3 + $0x48] sm:$0xff]  ;;  %v1650_v44 = vpack.c.bf16 %v502_v41, %v501_v39  ;;  %v503_v47 = vld [vmem:[%s2689_s1 + $0x1e0] sm:$0x3f]  ;;  %v441_v48 = vld [vmem:[%s2130_s30 + $0x10] sm:$0xff]  ;;  %s431_s30 = sand.u32 1, %s1890_s26  }
  0x29   : > { %v1665_v45 = vpack.c.bf16 %v669_v43, %v668_v42  ;;  %v670_v49 = vld [vmem:[%s2691_s3 + $0x50] sm:$0xff]  ;;  %v671_v50 = vld [vmem:[%s2691_s3 + $0x58] sm:$0xff]  ;;  %v672_v52 = vld [vmem:[%s2691_s3 + $0x60] sm:$0xff]  ;;  %s1353_s19 = sshll.u32 %s431_s30, 5  ;;  %s1276_s29 = scalar_lea.sflag [#allocation3], %s431_s30 }
  0x2a   : > { %1601 = vmatpush3.bf16.msra.mxu0 %v1600_v62  ;;  %v1668_v51 = vpack.c.bf16 %v671_v50, %v670_v49  ;;  %v673_v53 = vld [vmem:[%s2691_s3 + $0x68] sm:$0xff]  ;;  %v674_v55 = vld [vmem:[%s2691_s3 + $0x70] sm:$0xff]  ;;  %v675_v56 = vld [vmem:[%s2691_s3 + $0x78] sm:$0xff]  ;;  %s433_s17 = scalar_lea.vmem [#allocation2], %s1353_s19 }
  0x2b   : > { %1630 = vmatpush1.bf16.msra.mxu1 %v1629_v60  ;;  %1603 = vmatprep.subr.bf16.mxu0 %v1602_v0  ;;  %v1671_v54 = vpack.c.bf16 %v673_v53, %v672_v52  ;;  %v1674_v57 = vpack.c.bf16 %v675_v56, %v674_v55  ;;  %v754_v58 = vld [vmem:[%s2693_s5] sm:$0xff]  ;;  %v755_v59 = vld [vmem:[%s2693_s5 + $0x8] sm:$0xff]  ;;  %v756_v60 = vld [vmem:[%s2693_s5 + $0x10] sm:$0xff]  ;;  %s1290_s16 = sshll.u32 %s433_s17, 4  ;;  %s2645_s16 = int_to_ptr.vmem [resolvable:$true] %s1290_s16 }
  0x2c   : > { %1631 = vmatprep.subr.bf16.mxu1 %v1900_v3  ;;  %v1677_v61 = vpack.c.bf16 %v755_v59, %v754_v58  ;;  %v757_v62 = vld [vmem:[%s2693_s5 + $0x18] sm:$0xff]  ;;  %v758_v0 = vld [vmem:[%s2693_s5 + $0x20] sm:$0xff]  ;;  %v759_v1 = vld [vmem:[%s2693_s5 + $0x28] sm:$0xff]  ;;  %s1836_s23 = scalar_lea.vmem %s2645_s16, 512  ;;  %p1843_p0 = scmp.lt.s32.totalorder %s2645_s16, %s1841_s27 }
  0x2d   : > { %v1680_v63 = vpack.c.bf16 %v757_v62, %v756_v60  ;;  %v1683_v2 = vpack.c.bf16 %v759_v1, %v758_v0  ;;  %v760_v4 = vld [vmem:[%s2693_s5 + $0x30] sm:$0xff]  ;;  %v761_v5 = vld [vmem:[%s2693_s5 + $0x38] sm:$0xff]  ;;  %v762_v7 = vld [vmem:[%s2693_s5 + $0x40] sm:$0xff]  ;;  %p1837_p11 = scmp.ne.s32.totalorder %s2645_s16, %s1836_s23  ;;  %p1844_p1 = scmp.lt.s32.totalorder %s1842_s14, %s1836_s23 }
  0x2e   : > { %1605 = vmatpush3.bf16.msra.mxu0 %v1604_v8  ;;  %v763_v8 = vld [vmem:[%s2693_s5 + $0x48] sm:$0xff]  ;;  %v765_v11 = vld [vmem:[%s2693_s5 + $0x58] sm:$0xff]  ;;  %v768_v25 = vld [vmem:[%s2693_s5 + $0x70] sm:$0xff] }
  0x2f   : > { %1633 = vmatpush1.bf16.msra.mxu1 %v1632_v6  ;;  %1607 = vmatprep.subr.bf16.mxu0 %v1606_v10  ;;  %v1686_v6 = vpack.c.bf16 %v761_v5, %v760_v4  ;;  %v1689_v9 = vpack.c.bf16 %v763_v8, %v762_v7  ;;  %v764_v10 = vld [vmem:[%s2693_s5 + $0x50] sm:$0xff]  ;;  %v767_v14 = vld [vmem:[%s2693_s5 + $0x68] sm:$0xff]  ;;  %v847_v29 = vld [vmem:[%s2695_s7] sm:$0xff]  ;;  %p1838_p12 = pnand %p1837_p11, %p2012_p5  ;;  %p1845_p2 = por %p1844_p1, %p1843_p0 }
  0x30   : > { %1634 = vmatprep.subr.bf16.mxu1 %v1900_v3  ;;  %v1692_v12 = vpack.c.bf16 %v765_v11, %v764_v10  ;;  %v848_v30 = vld [vmem:[%s2695_s7 + $0x8] sm:$0xff]  ;;  %v849_v36 = vld [vmem:[%s2695_s7 + $0x10] sm:$0xff]  ;;  %v850_v37 = vld [vmem:[%s2695_s7 + $0x18] sm:$0xff] }
  0x31   : > { %v933_v39 = vld [vmem:[%s2697_s9] sm:$0xff]  ;;  %v935_v41 = vld [vmem:[%s2697_s9 + $0x10] sm:$0xff]  ;;  %v936_v43 = vld [vmem:[%s2697_s9 + $0x18] sm:$0xff]  ;;  %p1839_p13 = pneg %p1838_p12 }
  0x32   : > { %1609 = vmatpush3.bf16.msra.mxu0 %v1608_v15  ;;  %v939_v49 = vld [vmem:[%s2697_s9 + $0x30] sm:$0xff]  ;;  %v940_v50 = vld [vmem:[%s2697_s9 + $0x38] sm:$0xff]  ;;  %v941_v52 = vld [vmem:[%s2697_s9 + $0x40] sm:$0xff] }
  0x33   : > { %1636 = vmatpush1.bf16.msra.mxu1 %v1635_v13  ;;  %1652 = vmatprep.subr.bf16.mxu0 %v1900_v3  ;;  %v766_v13 = vld [vmem:[%s2693_s5 + $0x60] sm:$0xff]  ;;  %v942_v53 = vld [vmem:[%s2697_s9 + $0x48] sm:$0xff]  ;;  %v943_v55 = vld [vmem:[%s2697_s9 + $0x50] sm:$0xff]  ;;  %p1846_p3 = pnand %p1845_p2, %p1839_p13 }
  0x34   : > { %1637 = vmatprep.subr.bf16.mxu1 %v1900_v3  ;;  %v1695_v15 = vpack.c.bf16 %v767_v14, %v766_v13  ;;  %v944_v56 = vld [vmem:[%s2697_s9 + $0x58] sm:$0xff]  ;;  %v945_v58 = vld [vmem:[%s2697_s9 + $0x60] sm:$0xff]  ;;  %v946_v59 = vld [vmem:[%s2697_s9 + $0x68] sm:$0xff] }
  0x35   : > { %584 = vmatmul.mubr.f32.vlgmr.msra.gmra.mrb[0].mxu0 %v439_v21  ;;  %v1725_v60 = vpack.c.bf16 %v946_v59, %v945_v58  ;;  %v947_v1 = vld [vmem:[%s2697_s9 + $0x70] sm:$0xff]  ;;  %v1028_v4 = vld [vmem:[%s2699_s11 + $0x8] sm:$0xff]  ;;  %v1034_v8 = vld [vmem:[%s2699_s11 + $0x38] sm:$0xff] }
  0x36   : > { %1654 = vmatpush3.bf16.msra.mxu0 %v1653_v22  ;;  %1494 = vmatprep.mubr.msk.f32.mxu0 %vm1902_vm2, %v1901_v46  ;;  %v1032_v5 = vld [vmem:[%s2699_s11 + $0x28] sm:$0xff]  ;;  %v1031_v10 = vld [vmem:[%s2699_s11 + $0x20] sm:$0xff] }
  0x37   : > { %1639 = vmatpush1.bf16.msra.mxu1 %v1638_v19  ;;  %1655 = vmatprep.subr.bf16.mxu0 %v1900_v3  ;;  %v1356_v19 = vld [vmem:[%s2690_s2] ss:$0 sm:$0xff]  ;;  %v1730_v7 = vpack.c.bf16 %v1032_v5, %v1028_v4  ;;  %v1036_v13 = vld [vmem:[%s2699_s11 + $0x48] sm:$0xff]  ;;  %v1049_v4 = vld [vmem:[%s2699_s11 + $0xb0] sm:$0xff] }
  0x38   : > { %1640 = vmatprep.subr.bf16.mxu1 %v1900_v3  ;;  %v1040_v14 = vld [vmem:[%s2699_s11 + $0x68] sm:$0xff]  ;;  %v1054_v5 = vld [vmem:[%s2699_s11 + $0xd8] sm:$0xff] }
  0x3a   : > { %1657 = vmatpush3.bf16.msra.mxu0 %v1656_v28  ;;  %v1359_v28 = vld [vmem:[%s2692_s4] ss:$0 sm:$0xff] }
  0x3b   : > { %1642 = vmatpush1.bf16.msra.mxu1 %v1641_v26  ;;  %1658 = vmatprep.subr.bf16.mxu0 %v1900_v3  ;;  %v769_v26 = vld [vmem:[%s2693_s5 + $0x78] sm:$0xff] }
  0x3c   : > { %1643 = vmatprep.subr.bf16.mxu1 %v1900_v3  ;;  %v1698_v27 = vpack.c.bf16 %v769_v26, %v768_v25  ;;  %v1052_v25 = vld [vmem:[%s2699_s11 + $0xc8] sm:$0xff] }
  0x3d   : > { %v1056_v26 = vld [vmem:[%s2699_s11 + $0xe8] sm:$0xff] }
  0x3e   : > { %1660 = vmatpush3.bf16.msra.mxu0 %v1659_v34  ;;  %v1701_v34 = vpack.c.bf16 %v848_v30, %v847_v29  ;;  %v1055_v29 = vld [vmem:[%s2699_s11 + $0xe0] sm:$0xff] }
  0x3f   : > { %1645 = vmatpush1.bf16.msra.mxu1 %v1644_v32  ;;  %1661 = vmatprep.subr.bf16.mxu0 %v1900_v3 }
  0x40   : > { %1646 = vmatprep.subr.bf16.mxu1 %v1900_v3 }
  0x42   : > { %1663 = vmatpush3.bf16.msra.mxu0 %v1662_v40  ;;  %v934_v40 = vld [vmem:[%s2697_s9 + $0x8] sm:$0xff] }
  0x43   : > { %1648 = vmatpush1.bf16.msra.mxu1 %v1647_v38  ;;  %1664 = vmatprep.subr.bf16.mxu0 %v1900_v3  ;;  %v1704_v38 = vpack.c.bf16 %v850_v37, %v849_v36  ;;  %v1707_v42 = vpack.c.bf16 %v934_v40, %v933_v39  ;;  %v1068_v37 = vld [vmem:[%s2699_s11 + $0x148] sm:$0xff]  ;;  %v1067_v40 = vld [vmem:[%s2699_s11 + $0x140] sm:$0xff] }
  0x44   : > { %1649 = vmatprep.subr.bf16.mxu1 %v1900_v3 }
  0x46   : > { %1666 = vmatpush3.bf16.msra.mxu0 %v1665_v45  ;;  %v937_v45 = vld [vmem:[%s2697_s9 + $0x20] sm:$0xff] }
  0x47   : > { %1651 = vmatpush1.bf16.msra.mxu1 %v1650_v44  ;;  %1667 = vmatprep.subr.bf16.mxu0 %v1900_v3  ;;  %v1710_v44 = vpack.c.bf16 %v936_v43, %v935_v41  ;;  %v1071_v41 = vld [vmem:[%s2699_s11 + $0x160] sm:$0xff]  ;;  %v1076_v43 = vld [vmem:[%s2699_s11 + $0x188] sm:$0xff] }
  0x48   : > { %645 = vmatprep.subr.mxu1 %v1901_v46 }
  0x4a   : > { %1669 = vmatpush3.bf16.msra.mxu0 %v1668_v51  ;;  %v1716_v51 = vpack.c.bf16 %v940_v50, %v939_v49  ;;  %v1361_v50 = vld [vmem:[%s2696_s8] ss:$0 sm:$0xff] }
  0x4b   : > { %1357 = vmatpush1.msk.msra.mxu1 %vm515_vm1, %v503_v47  ;;  %1670 = vmatprep.subr.bf16.mxu0 %v1900_v3  ;;  %v938_v47 = vld [vmem:[%s2697_s9 + $0x28] sm:$0xff] }
  0x4c   : > { %654 = vmatmul.mubr.f32.vlgmr.msra.gmra.mrb[0].mxu1 %v441_v48  ;;  %1676 = vmatprep.subr.bf16.mxu1 %v1900_v3  ;;  %v1713_v48 = vpack.c.bf16 %v938_v47, %v937_v45  ;;  %v1075_v47 = vld [vmem:[%s2699_s11 + $0x180] sm:$0xff] }
  0x4d   : > { %1529 = vmatprep.mubr.msk.f32.mxu1 %vm1902_vm2, %v1901_v46  ;;  %1678 = vmatpush3.bf16.msra.mxu1 %v1677_v61  ;;  %v1360_v61 = vld [vmem:[%s2694_s6] ss:$0 sm:$0xff] }
  0x4e   : > { %1672 = vmatpush3.bf16.msra.mxu0 %v1671_v54  ;;  %1679 = vmatprep.subr.bf16.mxu1 %v1900_v3  ;;  %v1719_v54 = vpack.c.bf16 %v942_v53, %v941_v52  ;;  %v1033_v52 = vld [vmem:[%s2699_s11 + $0x30] sm:$0xff] }
  0x4f   : > { %1673 = vmatprep.subr.bf16.mxu0 %v1900_v3 }
  0x51   : > { %1681 = vmatpush3.bf16.msra.mxu1 %v1680_v63 }
  0x52   : > { %1675 = vmatpush3.bf16.msra.mxu0 %v1674_v57  ;;  %1682 = vmatprep.subr.bf16.mxu1 %v1900_v3  ;;  %v1722_v57 = vpack.c.bf16 %v944_v56, %v943_v55  ;;  %v1042_v55 = vld [vmem:[%s2699_s11 + $0x78] sm:$0xff] }
  0x53   : > { %1706 = vmatprep.subr.bf16.mxu0 %v1900_v3 }
  0x55   : > { %1684 = vmatpush3.bf16.msra.mxu1 %v1683_v2  ;;  %v948_v2 = vld [vmem:[%s2697_s9 + $0x78] sm:$0xff] }
  0x56   : > { %1685 = vmatprep.subr.bf16.mxu1 %v1900_v3 }
  0x59   : > { %1687 = vmatpush3.bf16.msra.mxu1 %v1686_v6  ;;  %v1030_v6 = vld [vmem:[%s2699_s11 + $0x18] sm:$0xff] }
  0x5a   : > { %1688 = vmatprep.subr.bf16.mxu1 %v1900_v3  ;;  %v1762_v11 = vpack.c.bf16 %v1034_v8, %v1030_v6  ;;  %v1058_v6 = vld [vmem:[%s2699_s11 + $0xf8] sm:$0xff]  ;;  %v1053_v8 = vld [vmem:[%s2699_s11 + $0xd0] sm:$0xff] }
  0x5d   : > { %1690 = vmatpush3.bf16.msra.mxu1 %v1689_v9  ;;  %v1027_v9 = vld [vmem:[%s2699_s11] sm:$0xff] }
  0x5e   : > { %1691 = vmatprep.subr.bf16.mxu1 %v1900_v3 }
  0x61   : > { %1693 = vmatpush3.bf16.msra.mxu1 %v1692_v12  ;;  %v1732_v12 = vpack.c.bf16 %v1031_v10, %v1027_v9  ;;  %v1057_v9 = vld [vmem:[%s2699_s11 + $0xf0] sm:$0xff]  ;;  %v1062_v10 = vld [vmem:[%s2699_s11 + $0x118] sm:$0xff] }
  0x62   : > { %1694 = vmatprep.subr.bf16.mxu1 %v1900_v3 }
  0x65   : > { %1696 = vmatpush3.bf16.msra.mxu1 %v1695_v15  ;;  %v1734_v15 = vpack.c.bf16 %v1040_v14, %v1036_v13  ;;  %v1061_v14 = vld [vmem:[%s2699_s11 + $0x110] sm:$0xff] }
  0x66   : > { %1697 = vmatprep.subr.bf16.mxu1 %v1900_v3 }
  0x69   : > { %1699 = vmatpush3.bf16.msra.mxu1 %v1698_v27  ;;  %v1742_v27 = vpack.c.bf16 %v1056_v26, %v1052_v25  ;;  %v1077_v26 = vld [vmem:[%s2699_s11 + $0x190] sm:$0xff] }
  0x6a   : > { %1700 = vmatprep.subr.bf16.mxu1 %v1900_v3 }
 0x108   : > { %v1403_v16 = vpop.f32.mrb[0].mxu0 }
 0x109   : > { %v1404_v17 = vpop.f32.mrb[1].mxu0 }
 0x10a   : > { %v1405_v18 = vadd.f32 %v1404_v17, %v1403_v16  ;;  %v1035_v16 = vld [vmem:[%s2699_s11 + $0x40] sm:$0xff] }
 0x10b   : > { %v1039_v17 = vld [vmem:[%s2699_s11 + $0x60] sm:$0xff] }
 0x10c   : > { %v586_v20 = vadd.f32 %v1405_v18, %v1356_v19  ;;  %v1736_v18 = vpack.c.bf16 %v1039_v17, %v1035_v16  ;;  %v1044_v19 = vld [vmem:[%s2699_s11 + $0x88] sm:$0xff]  ;;  %v1070_v16 = vld [vmem:[%s2699_s11 + $0x158] sm:$0xff] }
 0x10d   : > { %v1074_v17 = vld [vmem:[%s2699_s11 + $0x178] sm:$0xff] }
 0x11f   : > { %v655_v21 = vpop.f32.mrb[0].mxu1 }
 0x120   : > { %v656_v22 = vadd.f32 %v655_v21, %v586_v20  ;;  %v657_v23 = vpop.f32.mrb[1].mxu1  ;;  %v1048_v20 = vld [vmem:[%s2699_s11 + $0xa8] sm:$0xff] }
 0x121   : > { %v1738_v21 = vpack.c.bf16 %v1048_v20, %v1044_v19  ;;  %v1047_v23 = vld [vmem:[%s2699_s11 + $0xa0] sm:$0xff]  ;;  %v1782_v19 = vpack.c.bf16 %v1074_v17, %v1070_v16  ;;  %v1069_v20 = vld [vmem:[%s2699_s11 + $0x150] sm:$0xff] }
 0x122   : > { %v659_v24 = vmax.f32 %v656_v22, 0.0  ;;  %v1043_v22 = vld [vmem:[%s2699_s11 + $0x80] sm:$0xff] }
 0x124   : > { %1495 = vmatmul.mubr.f32.vlgmr.msra.gmra.mrb[2].mxu0 %v659_v24  ;;  %v1740_v24 = vpack.c.bf16 %v1047_v23, %v1043_v22  ;;  %v1078_v22 = vld [vmem:[%s2699_s11 + $0x198] sm:$0xff] }
 0x125   : > { %1575 = vmatprep.mubr.msk.f32.mxu0 %vm1902_vm2, %v1901_v46  ;;  %1708 = vmatpush3.bf16.msra.mxu0 %v1707_v42  ;;  %v1752_v42 = vpack.c.bf16 %v1071_v41, %v1067_v40  ;;  %v1082_v23 = vld [vmem:[%s2699_s11 + $0x1b8] sm:$0xff]  ;;  %v1363_v41 = vld [vmem:[%s2698_s10] ss:$0 sm:$0xff] }
 0x126   : > { %1709 = vmatprep.subr.bf16.mxu0 %v1900_v3  ;;  %v1786_v25 = vpack.c.bf16 %v1082_v23, %v1078_v22 }
 0x129   : > { %1711 = vmatpush3.bf16.msra.mxu0 %v1710_v44  ;;  %v1080_v44 = vld [vmem:[%s2699_s11 + $0x1a8] sm:$0xff] }
 0x12a   : > { %1712 = vmatprep.subr.bf16.mxu0 %v1900_v3  ;;  %v1754_v45 = vpack.c.bf16 %v1080_v44, %v1076_v43 }
 0x12d   : > { %1714 = vmatpush3.bf16.msra.mxu0 %v1713_v48  ;;  %v1079_v48 = vld [vmem:[%s2699_s11 + $0x1a0] sm:$0xff] }
 0x12e   : > { %1715 = vmatprep.subr.bf16.mxu0 %v1900_v3  ;;  %v1756_v49 = vpack.c.bf16 %v1079_v48, %v1075_v47  ;;  %v1093_v47 = vlaneseq }
 0x130   : > { %v1094_v48 = vshrl.u32 %v1093_v47, 7 }
 0x131   : > { %1717 = vmatpush3.bf16.msra.mxu0 %v1716_v51  ;;  %v1029_v51 = vld [vmem:[%s2699_s11 + $0x10] sm:$0xff] }
 0x132   : > { %1718 = vmatprep.subr.bf16.mxu0 %v1900_v3  ;;  %v1764_v58 = vpack.c.bf16 %v1033_v52, %v1029_v51  ;;  %v1091_v51 = vld [vmem:[%s2700_s12] sm:$0xf]  ;;  %v1099_v52 = vsub.s32 1, %v1094_v48 }
 0x135   : > { %1720 = vmatpush3.bf16.msra.mxu0 %v1719_v54  ;;  %v1038_v54 = vld [vmem:[%s2699_s11 + $0x58] sm:$0xff] }
 0x136   : > { %1721 = vmatprep.subr.bf16.mxu0 %v1900_v3 }
 0x139   : > { %1723 = vmatpush3.bf16.msra.mxu0 %v1722_v57 }
 0x13a   : > { %1724 = vmatprep.subr.bf16.mxu0 %v1900_v3 }
 0x13d   : > { %1726 = vmatpush3.bf16.msra.mxu0 %v1725_v60  ;;  %v1766_v60 = vpack.c.bf16 %v1042_v55, %v1038_v54 }
 0x13e   : > { %1727 = vmatprep.subr.bf16.mxu0 %v1900_v3 }
 0x1f7   : > { %v749_v31 = vpop.f32.mrb[2].mxu0 }
 0x1f8   : > { %v750_v32 = vadd.f32 %v1359_v28, %v749_v31  ;;  %v1496_v33 = vpop.f32.mrb[3].mxu0  ;;  %v1051_v28 = vld [vmem:[%s2699_s11 + $0xc0] sm:$0xff]  ;;  %v1060_v31 = vld [vmem:[%s2699_s11 + $0x108] sm:$0xff] }
 0x1f9   : > { %v1744_v30 = vpack.c.bf16 %v1055_v29, %v1051_v28  ;;  %v1084_v29 = vld [vmem:[%s2699_s11 + $0x1c8] sm:$0xff] }
 0x1fa   : > { %v753_v35 = vmax.f32 %v750_v32, 0.0  ;;  %v1064_v32 = vld [vmem:[%s2699_s11 + $0x128] sm:$0xff] }
 0x1fb   : > { %v1746_v33 = vpack.c.bf16 %v1064_v32, %v1060_v31  ;;  %v1086_v31 = vld [vmem:[%s2699_s11 + $0x1d8] sm:$0xff] }
 0x1fc   : > { %1530 = vmatmul.mubr.f32.vlgmr.msra.gmra.mrb[2].mxu1 %v753_v35  ;;  %v1063_v35 = vld [vmem:[%s2699_s11 + $0x120] sm:$0xff] }
 0x1fd   : > { %1702 = vmatpush3.bf16.msra.mxu1 %v1701_v34  ;;  %1540 = vmatprep.mubr.msk.f32.mxu1 %vm1902_vm2, %v1901_v46  ;;  %v1059_v34 = vld [vmem:[%s2699_s11 + $0x100] sm:$0xff] }
 0x1fe   : > { %1703 = vmatprep.subr.bf16.mxu1 %v1900_v3  ;;  %v1728_v3 = vpack.c.bf16 %v948_v2, %v947_v1  ;;  %v1748_v36 = vpack.c.bf16 %v1063_v35, %v1059_v34  ;;  %v1083_v34 = vld [vmem:[%s2699_s11 + $0x1c0] sm:$0xff] }
 0x1ff   : > { %v1087_v35 = vld [vmem:[%s2699_s11 + $0x1e0] sm:$0xff] }
 0x200   : > { %1729 = vmatpush3.bf16.msra.mxu0 %v1728_v3  ;;  %v1045_v3 = vld [vmem:[%s2699_s11 + $0x90] sm:$0xff] }
 0x201   : > { %1705 = vmatpush3.bf16.msra.mxu1 %v1704_v38  ;;  %1763 = vmatprep.subr.bf16.mxu0 %v1762_v11  ;;  %v1072_v38 = vld [vmem:[%s2699_s11 + $0x168] sm:$0xff]  ;;  %v1066_v11 = vld [vmem:[%s2699_s11 + $0x138] sm:$0xff] }
 0x202   : > { %1731 = vmatprep.subr.bf16.mxu1 %v1730_v7  ;;  %v1750_v39 = vpack.c.bf16 %v1072_v38, %v1068_v37  ;;  %v1774_v7 = vpack.c.bf16 %v1058_v6, %v1054_v5  ;;  %v1778_v13 = vpack.c.bf16 %v1066_v11, %v1062_v10  ;;  %v1760_v37 = vpack.c.bf16 %v1087_v35, %v1083_v34  ;;  %v1085_v38 = vld [vmem:[%s2699_s11 + $0x1d0] sm:$0xff] }
 0x2cf   : > { %v843_v62 = vpop.f32.mrb[2].mxu1 }
 0x2d0   : > { %v844_v63 = vadd.f32 %v1360_v61, %v843_v62  ;;  %v1531_v0 = vpop.f32.mrb[3].mxu1  ;;  %v1037_v61 = vld [vmem:[%s2699_s11 + $0x50] sm:$0xff] }
 0x2d1   : > { %v1041_v62 = vld [vmem:[%s2699_s11 + $0x70] sm:$0xff]  ;;  %v1050_v0 = vld [vmem:[%s2699_s11 + $0xb8] sm:$0xff] }
 0x2d2   : > { %1541 = vmatmul.mubr.msk.f32.vlgmr.msra.gmra.mrb[4].mxu1 %vm858_vm3, %v844_v63  ;;  %v1046_v63 = vld [vmem:[%s2699_s11 + $0x98] sm:$0xff]  ;;  %v1768_v1 = vpack.c.bf16 %v1041_v62, %v1037_v61 }
 0x2d3   : > { %1177 = vmatprep.mubr.f32.mxu1 %v1901_v46  ;;  %1733 = vmatpush1.bf16.msra.mxu1 %v1732_v12  ;;  %v1770_v2 = vpack.c.bf16 %v1050_v0, %v1046_v63  ;;  %v1776_v12 = vpack.c.bf16 %v1057_v9, %v1053_v8 }
 0x2d4   : > { %1735 = vmatprep.subr.bf16.mxu1 %v1734_v15  ;;  %v1065_v15 = vld [vmem:[%s2699_s11 + $0x130] sm:$0xff] }
 0x2d7   : > { %1737 = vmatpush1.bf16.msra.mxu1 %v1736_v18  ;;  %v1780_v18 = vpack.c.bf16 %v1065_v15, %v1061_v14 }
 0x2d8   : > { %1739 = vmatprep.subr.bf16.mxu1 %v1738_v21  ;;  %v1073_v21 = vld [vmem:[%s2699_s11 + $0x170] sm:$0xff] }
 0x2db   : > { %1741 = vmatpush1.bf16.msra.mxu1 %v1740_v24  ;;  %v1784_v24 = vpack.c.bf16 %v1073_v21, %v1069_v20 }
 0x2dc   : > { %1743 = vmatprep.subr.bf16.mxu1 %v1742_v27  ;;  %v1081_v27 = vld [vmem:[%s2699_s11 + $0x1b0] sm:$0xff] }
 0x2dd   : > { %v1788_v28 = vpack.c.bf16 %v1081_v27, %v1077_v26 }
 0x2df   : > { %1745 = vmatpush1.bf16.msra.mxu1 %v1744_v30  ;;  %v1088_v30 = vld [vmem:[%s2699_s11 + $0x1e8] sm:$0xff] }
 0x2e0   : > { %1747 = vmatprep.subr.bf16.mxu1 %v1746_v33  ;;  %v1758_v32 = vpack.c.bf16 %v1088_v30, %v1084_v29  ;;  %v1090_v33 = vld [vmem:[%s2699_s11 + $0x1f8] sm:$0xff] }
 0x2e3   : > { %1749 = vmatpush1.bf16.msra.mxu1 %v1748_v36  ;;  %v1790_v36 = vpack.c.bf16 %v1090_v33, %v1086_v31 }
 0x2e4   : > { %1751 = vmatprep.subr.bf16.mxu1 %v1750_v39  ;;  %v1089_v39 = vld [vmem:[%s2699_s11 + $0x1f0] sm:$0xff] }
 0x2e5   : > { %v1792_v40 = vpack.c.bf16 %v1089_v39, %v1085_v38 }
 0x2e7   : > { %1753 = vmatpush1.bf16.msra.mxu1 %v1752_v42 }
 0x2e8   : > { %1755 = vmatprep.subr.bf16.mxu1 %v1754_v45 }
 0x2eb   : > { %1757 = vmatpush1.bf16.msra.mxu1 %v1756_v49  ;;  %v1095_v49 = vsub.s32 0, %v1094_v48 }
 0x2ec   : > { %1759 = vmatprep.subr.bf16.mxu1 %v1758_v32 }
 0x2ed   : > { %v1096_v54 = vrot.slane %v1091_v51, %v1095_v49 }
 0x2ef   : > { %1761 = vmatpush1.bf16.msra.mxu1 %v1760_v37 }
 0x3a5   : > { %v928_v53 = vpop.f32.mrb[4].mxu1 }
 0x3a6   : > { %v929_v56 = vadd.f32 %v1361_v50, %v928_v53  ;;  %v1542_v57 = vpop.f32.mrb[5].mxu1  ;;  %v1103_v50 = vsub.s32 2, %v1094_v48  ;;  %v1107_v53 = vsub.s32 3, %v1094_v48 }
 0x3a8   : > { %v932_v59 = vmax.f32 %v929_v56, 0.0  ;;  %v1104_v55 = vrot.slane %v1091_v51, %v1103_v50  ;;  %v1100_v56 = vrot.slane %v1091_v51, %v1099_v52  ;;  %v1108_v57 = vrot.slane %v1091_v51, %v1107_v53 }
 0x3aa   : > { %1576 = vmatmul.mubr.f32.vlgmr.msra.gmra.mrb[4].mxu0 %v932_v59 }
 0x3ab   : > { %1765 = vmatpush1.bf16.msra.mxu0 %v1764_v58  ;;  %1248 = vmatprep.mubr.f32.mxu0 %v1901_v46  ;;  %v1772_v46 = vpack.c.bf16 %v1049_v4, %v1045_v3 }
 0x3ac   : > { %1767 = vmatprep.subr.bf16.mxu0 %v1766_v60 }
 0x3af   : > { %1769 = vmatpush1.bf16.msra.mxu0 %v1768_v1 }
 0x3b0   : > { %1771 = vmatprep.subr.bf16.mxu0 %v1770_v2 }
 0x3b3   : > { %1773 = vmatpush1.bf16.msra.mxu0 %v1772_v46 }
 0x3b4   : > { %1775 = vmatprep.subr.bf16.mxu0 %v1774_v7 }
 0x3b7   : > { %1777 = vmatpush1.bf16.msra.mxu0 %v1776_v12 }
 0x3b8   : > { %1779 = vmatprep.subr.bf16.mxu0 %v1778_v13 }
 0x3bb   : > { %1781 = vmatpush1.bf16.msra.mxu0 %v1780_v18 }
 0x3bc   : > { %1783 = vmatprep.subr.bf16.mxu0 %v1782_v19 }
 0x3bf   : > { %1785 = vmatpush1.bf16.msra.mxu0 %v1784_v24 }
 0x3c0   : > { %1787 = vmatprep.subr.bf16.mxu0 %v1786_v25 }
 0x3c3   : > { %1789 = vmatpush1.bf16.msra.mxu0 %v1788_v28 }
 0x3c4   : > { %1791 = vmatprep.subr.bf16.mxu0 %v1790_v36 }
 0x3c7   : > { %1793 = vmatpush1.bf16.msra.mxu0 %v1792_v40 }
 0x47d   : > { %v1022_v42 = vpop.f32.mrb[4].mxu0 }
 0x47e   : > { %v1023_v43 = vadd.f32 %v1363_v41, %v1022_v42  ;;  %v1577_v44 = vpop.f32.mrb[5].mxu0 }
 0x480   : > { %v1026_v45 = vmax.f32 %v1023_v43, 0.0 }
 0x482   : > { %1178 = vmatmul.mubr.f32.vlgmr.msra.gmra.mrb[6].mxu1 %v1026_v45  ;;  %1249 = vmatmul.mubr.f32.vlgmr.msra.gmra.mrb[6].mxu0 %v1026_v45 }
 0x555   : > { %v1179_v58 = vpop.f32.mrb[6].mxu1  ;;  %v1250_v59 = vpop.f32.mrb[6].mxu0 }
 0x556   : > { %v1180_v60 = vadd.f32 %v1179_v58, %v1096_v54  ;;  %v1251_v61 = vadd.f32 %v1250_v59, %v1104_v55  ;;  %v1181_v62 = vpop.f32.mrb[7].mxu1  ;;  %v1252_v63 = vpop.f32.mrb[7].mxu0 }
 0x557   : > { %v1182_v0 = vadd.f32 %v1181_v62, %v1100_v56  ;;  %v1253_v1 = vadd.f32 %v1252_v63, %v1108_v57 }
 0x558   : > { %v1255_v2 = vmul.f32 0.16666667, %v1180_v60  ;;  %v1257_v3 = vmul.f32 0.16666667, %v1251_v61 }
 0x559   : > { %v1256_v4 = vmul.f32 0.16666667, %v1182_v0  ;;  %v1258_v5 = vmul.f32 0.16666667, %v1253_v1 }
 0x55a   : > { %v1259_v6 = vadd.f32 0.5, %v1255_v2  ;;  %v1261_v46 = vadd.f32 0.5, %v1257_v3 }
 0x55b   : > { %v1260_v7 = vadd.f32 0.5, %v1256_v4  ;;  %v1262_v8 = vadd.f32 0.5, %v1258_v5 }
 0x55c   : > { %v1263_v9 = vmax.f32 %v1259_v6, 0.0  ;;  %v1265_v10 = vmax.f32 %v1261_v46, 0.0 }
 0x55d   : > { %v1264_v11 = vmax.f32 %v1260_v7, 0.0  ;;  %v1266_v12 = vmax.f32 %v1262_v8, 0.0 }
 0x55e   : > { %v1267_v13 = vmin.f32 %v1263_v9, 1.0  ;;  %v1269_v14 = vmin.f32 %v1265_v10, 1.0 }
 0x55f   : > { %v1268_v15 = vmin.f32 %v1264_v11, 1.0  ;;  %v1270_v16 = vmin.f32 %v1266_v12, 1.0 }
 0x560   : > { %1271 = vst [vmem:[%s433_s17] sm:$0xff] %v1267_v13  ;;  %1273 = vst [vmem:[%s433_s17 + $0x10] sm:$0xff] %v1269_v14 }
 0x561   : > { %1272 = vst [vmem:[%s433_s17 + $0x8] sm:$0xff] %v1268_v15  ;;  %1274 = vst.msk [vmem:[%s433_s17 + $0x18] sm:$0xff] %vm511_vm0, %v1270_v16 }
 0x562   : > { %1849 = shalt.err (!%p1846_p3)
}
 0x563   : > { %s1850_s30 = scalar_lea.hbm %s2643_s22, 512  ;;  %s1854_s17 = scalar_lea.hbm %s2701_s13, 1024 }
 0x564   : > { %p1851_p4 = scmp.ne.s32.totalorder %s2643_s22, %s1850_s30  ;;  %p1855_p9 = scmp.lt.u32.totalorder %s2643_s22, %s2701_s13 }
 0x565   : > { %p1856_p10 = scmp.lt.u32.totalorder %s1854_s17, %s1850_s30  ;;  %p1858_p12 = scmp.lt.u32.totalorder %s1850_s30, %s2643_s22 }
 0x566   : > { %p1852_p7 = pnand %p1851_p4, %p2012_p5 }
 0x567   : > { %p1857_p11 = por %p1856_p10, %p1855_p9 }
 0x568   : > { %p1853_p8 = pneg %p1852_p7 }
 0x569   : > { %p1859_p13 = por %p1858_p12, %p1857_p11 }
 0x56b   : > { %p1860_p0 = pnand %p1859_p13, %p1853_p8 }
 0x56d   : > { %1863 = shalt.err (!%p1860_p0)
}
 0x56e   : > { %1794 = dma.vmem_to_hbm [thread:$0]  (%p2012_p5), %s2645_s16, 512, %s2643_s22, %s1276_s29  }
 0x56f PF: > { %p1800_p1 = scmp.ge.s32.totalorder %s1898_s28, 2  ;;  %s1302_s15 = sand.u32 1, %s1886_s25  }
 0x570   : > { %s1303_s27 = scalar_lea.sflag [#allocation3], %s1302_s15 }
 0x571   : > { %p1797_p2 = pnand %p1800_p1, %p2016_p6 }
 0x573   : > { %1881 = dma.done.wait (!%p1797_p2), %s1303_s27, 512  }
 0x574   : > { %1883 = vsyncadd (!%p1797_p2), %s1303_s27, 4294966784  ;;  %s2713_s28 = sld [smem:[#allocation6_spill]]  ;;  %s2714_s14 = sld [smem:[#allocation5_spill]] }
 0x575   : > { %s2715_s27 = sld [smem:[#allocation7_spill]]  ;;  %s2716_s25 = smov %s1890_s26 }
 0x57a   : > { %p23_p3 = scmp.ge.s32.totalorder %s2713_s28, 4   ;;  %s2717_s26 = smov %s2714_s14 }
 0x57c   :  { %25 = sbr.rel (!%p23_p3) target bundleno = 3 (0x3), region = 107 }
 0x583   :  { %1308 = vsyncpa [#allocation3], 1 }
 0x584   :  { %1310 = vsyncpa [#allocation3 + $0x1], 1 }

</bundles_post_ra>
